<compile_context>
chip_gen: v6e
topology: v6e:2x2x1
jax: 0.10.0
libtpu: 0.0.40
codegen_flags: <defaults>
</compile_context>

<pallas_src>
import functools

import jax
import jax.numpy as jnp
from jax import lax
from jax.experimental import pallas as pl
from jax.experimental.pallas import tpu as pltpu


def _max_margin_kernel(x_ref, dcol_ref, drow_ref, out_ref, *,
                       margin, fix_norm, n, tm):
    i = pl.program_id(0)
    m = jnp.float32(margin)

    # Single explicit widen (1 convert/elem, reused by both halves); f32 math.
    x = x_ref[...].astype(jnp.float32)            # (tm, n) row block
    d_col = dcol_ref[...].astype(jnp.float32)     # (tm, 1): x[r, r] for rows in block
    d_row = drow_ref[...].astype(jnp.float32)     # (1, n) : x[c, c] for every column

    # Fused halves (second half is the transposed term re-indexed onto the
    # same row block):
    #   relu(margin - (x[r,r] - x[r,c]))  +  relu(margin - (x[c,c] - x[r,c]))
    contrib = jnp.maximum(m - d_col + x, 0.0) + jnp.maximum(m - d_row + x, 0.0)

    relu_margin = max(float(margin), 0.0)         # relu(margin - 0), static

    def finalize(tile_sum, n_valid_rows):
        # fix_norm: each in-range row owns exactly one diagonal pair per half,
        # each worth relu(margin): subtract instead of masking the diagonal.
        if fix_norm:
            tile_sum = tile_sum - (2.0 * relu_margin) * jnp.float32(n_valid_rows)
        return tile_sum

    has_partial = (n % tm) != 0                   # static (trace-time) decision
    if has_partial:
        is_last = i == pl.num_programs(0) - 1

        @pl.when(jnp.logical_not(is_last))
        def _full_tile():
            out_ref[0, 0] = finalize(jnp.sum(contrib), tm)

        @pl.when(is_last)
        def _ragged_tile():
            # Only the last tile can overhang: mask out-of-range rows here and
            # nowhere else.  Keep the select (NOT a 0/1 multiply) so garbage /
            # non-finite padding rows cannot leak into the sum.
            rows = i * tm + lax.broadcasted_iota(jnp.int32, (tm, 1), 0)
            s = jnp.sum(jnp.where(rows < n, contrib, 0.0))
            out_ref[0, 0] = finalize(s, n % tm)
    else:
        out_ref[0, 0] = finalize(jnp.sum(contrib), tm)


def _vmem_capacity_bytes():
    try:
        cap = getattr(pltpu.get_tpu_info(), "vmem_capacity_bytes", None)
        if cap:
            return int(cap)
    except Exception:
        pass
    return 64 * 1024 * 1024   # conservative fallback (v7x-sized VMEM)


def max_margin_ranking_loss(x, margin=1.0, fix_norm=True, *,
                            block_rows=None, wire_dtype=None):
    """Pallas implementation of MaxMarginRankingLoss.forward (returns a scalar)."""
    n = x.shape[0]
    assert x.shape == (n, n), "input must be a square similarity matrix"

    # Optional wire-dtype downcast (e.g. jnp.bfloat16 on HBM-bound v5e when the
    # loss tolerance allows); default keeps caller dtype / exact semantics.
    if wire_dtype is not None:
        x = x.astype(wire_dtype)

    # Diagonal extracted once with an O(n) gather (never an n^2 mask-reduce),
    # passed in native dtype as a (n,1) column (per row block) and a resident
    # (1,n) row (for the transposed half).
    idx = jnp.arange(n)
    d = x[idx, idx]
    d_col = d.reshape(n, 1)
    d_row = d.reshape(1, n)

    itemsize = jnp.dtype(x.dtype).itemsize
    vmem_cap = _vmem_capacity_bytes()

    if block_rows is None:
        # Per-row VMEM footprint: double-buffered wire tile + ~2x tm*n f32
        # in-kernel temporaries (widened tile + contrib).
        per_row = n * (2 * itemsize + 2 * 4)
        budget = min(int(0.70 * vmem_cap), 80 * 1024 * 1024)
        tm = max(8, (budget // per_row) // 8 * 8)
        tm = int(min(512, tm))
    else:
        tm = int(block_rows)   # caller keeps it a multiple of 8 (or >= n)
    if tm >= n:
        tm = n                 # block == full dim is always legal
    nblk = pl.cdiv(n, tm)

    kernel = functools.partial(
        _max_margin_kernel,
        margin=float(margin), fix_norm=bool(fix_norm), n=n, tm=tm,
    )

    # VMEM limit counts the f32 compute temporaries, not just the native-dtype
    # double-buffered input (matters on v7x's 64 MiB physical VMEM with bf16).
    need = (2 * tm * n * itemsize               # double-buffered x tile
            + 2 * tm * n * 4                    # f32 widened tile + contrib
            + 4 * (tm + n) * max(itemsize, 4)   # diagonal side inputs
            + (4 << 20))                        # internal-scratch headroom
    vmem_limit = int(min(max(need, 32 << 20), vmem_cap - (8 << 20)))

    partials = pl.pallas_call(
        kernel,
        out_shape=jax.ShapeDtypeStruct((nblk, 1), jnp.float32),
        grid=(nblk,),
        in_specs=[
            pl.BlockSpec((tm, n), lambda i: (i, 0)),   # row block of x (native dtype)
            pl.BlockSpec((tm, 1), lambda i: (i, 0)),   # matching diagonal slice
            pl.BlockSpec((1, n), lambda i: (0, 0)),    # full diagonal row, resident
        ],
        # One partial sum per row block, each in its own SMEM output block, so
        # grid steps are independent -> axis can be "parallel" (uses both
        # TensorCores on v7x; neutral on single-TC v5e/v6e).
        out_specs=pl.BlockSpec((1, 1), lambda i: (i, 0),
                               memory_space=pltpu.MemorySpace.SMEM),
        compiler_params=pltpu.CompilerParams(
            dimension_semantics=("parallel",),
            vmem_limit_bytes=vmem_limit,
        ),
    )(x, d_col, d_row)

    denom = 2.0 * n * (n - 1) if fix_norm else 2.0 * n * n
    # NOTE: n == 1 with fix_norm=True yields 0/0 = NaN, identical to PyTorch's
    # mean() over an empty selection.
    return jnp.sum(partials) / jnp.float32(denom)


def _reference_loss(x, margin=1.0, fix_norm=True):
    """Pure-JAX transcription of the PyTorch forward, for verification."""
    n = x.shape[0]
    d = jnp.diag(x)
    half1 = jax.nn.relu(margin - (d[:, None] - x))      # x[i,i] vs x[i,j]
    half2 = jax.nn.relu(margin - (d[:, None] - x.T))    # x[i,i] vs x[j,i]
    if fix_norm:
        keep = 1.0 - jnp.eye(n, dtype=x.dtype)
        total = jnp.sum(half1 * keep) + jnp.sum(half2 * keep)
        return total / (2.0 * n * (n - 1))
    return (jnp.sum(half1) + jnp.sum(half2)) / (2.0 * n * n)


if __name__ == "__main__":
    key = jax.random.PRNGKey(0)
    k1, k2 = jax.random.split(key)

    # Small paired-embedding similarity matrix (n text/video pairs -> (n, n)).
    n1 = 8
    x1 = jax.random.normal(k1, (n1, n1), dtype=jnp.float32)
    for fix_norm in (True, False):
        got = jax.block_until_ready(
            max_margin_ranking_loss(x1, margin=1.0, fix_norm=fix_norm))
        ref = _reference_loss(x1, margin=1.0, fix_norm=fix_norm)
        assert jnp.allclose(got, ref, rtol=1e-5, atol=1e-5), (fix_norm, got, ref)

    # Multi-block "parallel" grid with a ragged last tile (20 rows, 8-row blocks).
    n2 = 20
    x2 = jax.random.normal(k2, (n2, n2), dtype=jnp.float32)
    got = jax.block_until_ready(
        max_margin_ranking_loss(x2, margin=1.0, fix_norm=True, block_rows=8))
    ref = _reference_loss(x2, margin=1.0, fix_norm=True)
    assert jnp.allclose(got, ref, rtol=1e-5, atol=1e-5), (got, ref)

    # Default tile-size heuristic (collapses to a single full-height block here).
    got = jax.block_until_ready(
        max_margin_ranking_loss(x2, margin=1.0, fix_norm=False))
    ref = _reference_loss(x2, margin=1.0, fix_norm=False)
    assert jnp.allclose(got, ref, rtol=1e-5, atol=1e-5), (got, ref)

    # Native bf16 input stays bf16 on the wire; accumulation is f32 in-kernel.
    xb = x2.astype(jnp.bfloat16)
    got = jax.block_until_ready(
        max_margin_ranking_loss(xb, margin=1.0, fix_norm=True, block_rows=8))
    ref = _reference_loss(xb.astype(jnp.float32), margin=1.0, fix_norm=True)
    assert jnp.allclose(got, ref, rtol=1e-4, atol=1e-4), (got, ref)

    print("KERNEL_OK")
</pallas_src>

<mosaic_0001>
module attributes {stable_mosaic.version = 11 : i64} {
  func.func @_max_margin_kernel(%arg0: i32, %arg1: memref<8x8xf32, #tpu.memory_space<vmem>>, %arg2: memref<8x1xf32, #tpu.memory_space<vmem>>, %arg3: memref<1x8xf32, #tpu.memory_space<vmem>>, %arg4: memref<1x1xf32, #tpu.memory_space<smem>>) attributes {dimension_semantics = [#tpu.dimension_semantics<parallel>], iteration_bounds = array<i64: 1>, scalar_prefetch = 0 : i64, scratch_operands = 0 : i64, tpu.core_type = #tpu.core_type<tc>, window_params = [{transform_indices = @transform_0, window_bounds = array<i64: 8, 8>}, {transform_indices = @transform_1, window_bounds = array<i64: 8, 1>}, {pipeline_mode = #tpu.pipeline_mode<synchronous>, transform_indices = @transform_2, window_bounds = array<i64: 1, 8>}, {transform_indices = @transform_3, window_bounds = array<i64: 1, 1>}]} {
    %c0 = arith.constant 0 : index
    %c0_0 = arith.constant 0 : index
    %0 = vector.load %arg1[%c0, %c0_0] : memref<8x8xf32, #tpu.memory_space<vmem>>, vector<8x8xf32>
    %c0_1 = arith.constant 0 : index
    %c0_2 = arith.constant 0 : index
    %1 = vector.load %arg2[%c0_1, %c0_2] : memref<8x1xf32, #tpu.memory_space<vmem>>, vector<8x1xf32>
    %c0_3 = arith.constant 0 : index
    %c0_4 = arith.constant 0 : index
    %2 = vector.load %arg3[%c0_3, %c0_4] : memref<1x8xf32, #tpu.memory_space<vmem>>, vector<1x8xf32>
    %cst = arith.constant 1.000000e+00 : f32
    %3 = vector.broadcast %cst : f32 to vector<8x1xf32>
    %4 = arith.subf %3, %1 : vector<8x1xf32>
    %5 = vector.broadcast %4 : vector<8x1xf32> to vector<8x8xf32>
    %6 = arith.addf %5, %0 : vector<8x8xf32>
    %cst_5 = arith.constant 0.000000e+00 : f32
    %7 = vector.broadcast %cst_5 : f32 to vector<8x8xf32>
    %8 = arith.maximumf %6, %7 : vector<8x8xf32>
    %cst_6 = arith.constant 1.000000e+00 : f32
    %9 = vector.broadcast %cst_6 : f32 to vector<1x8xf32>
    %10 = arith.subf %9, %2 : vector<1x8xf32>
    %11 = vector.broadcast %10 : vector<1x8xf32> to vector<8x8xf32>
    %12 = arith.addf %11, %0 : vector<8x8xf32>
    %cst_7 = arith.constant 0.000000e+00 : f32
    %13 = vector.broadcast %cst_7 : f32 to vector<8x8xf32>
    %14 = arith.maximumf %12, %13 : vector<8x8xf32>
    %15 = arith.addf %8, %14 : vector<8x8xf32>
    %16 = vector.shape_cast %15 : vector<8x8xf32> to vector<1x8x8xf32>
    %cst_8 = arith.constant dense<0.000000e+00> : vector<1xf32>
    %17 = vector.multi_reduction <add>, %16, %cst_8 [1, 2] : vector<1x8x8xf32> to vector<1xf32>
    %18 = vector.shape_cast %17 : vector<1xf32> to vector<1x1x1xf32>
    %19 = vector.extract %18[0, 0, 0] : f32 from vector<1x1x1xf32>
    %cst_9 = arith.constant 2.000000e+00 : f32
    %cst_10 = arith.constant 8.000000e+00 : f32
    %20 = arith.mulf %cst_9, %cst_10 : f32
    %21 = arith.subf %19, %20 : f32
    %c0_11 = arith.constant 0 : index
    %c0_12 = arith.constant 0 : index
    %22 = memref.load %arg4[%c0_11, %c0_12] : memref<1x1xf32, #tpu.memory_space<smem>>
    memref.store %21, %arg4[%c0_11, %c0_12] : memref<1x1xf32, #tpu.memory_space<smem>>
    return
  }
  func.func @transform_0(%arg0: i32) -> (i32, i32) {
    %c0_i32 = arith.constant 0 : i32
    %c0_i32_0 = arith.constant 0 : i32
    return %arg0, %c0_i32 : i32, i32
  }
  func.func @transform_1(%arg0: i32) -> (i32, i32) {
    %c0_i32 = arith.constant 0 : i32
    %c0_i32_0 = arith.constant 0 : i32
    return %arg0, %c0_i32 : i32, i32
  }
  func.func @transform_2(%arg0: i32) -> (i32, i32) {
    %c0_i32 = arith.constant 0 : i32
    %c0_i32_0 = arith.constant 0 : i32
    %c0_i32_1 = arith.constant 0 : i32
    return %c0_i32, %c0_i32_0 : i32, i32
  }
  func.func @transform_3(%arg0: i32) -> (i32, i32) {
    %c0_i32 = arith.constant 0 : i32
    %c0_i32_0 = arith.constant 0 : i32
    return %arg0, %c0_i32 : i32, i32
  }
}

</mosaic_0001>

<bundles_post_ra>
// kernel: tpu_custom_call.1
= control target key start
LH: loop header
LB: loop body
LE: loop exit
PB: predicated region body
PF: predicated region fallthrough
CT: control target
= control target key end

     0   :  { %v79_v1 = vmov 0   ;;  %s113_s0 = inlined_call_operand.vmem [shape: f32[8,8], index: 0, kind: input, shape index: {}]   ;;  %s114_s1 = inlined_call_operand.vmem [shape: f32[8,1], index: 1, kind: input, shape index: {}]   ;;  %s115_s2 = inlined_call_operand.vmem [shape: f32[1,8], index: 2, kind: input, shape index: {}]   ;;  %s116_s3 = inlined_call_operand.hbm [shape: f32[1,1], index: 3, kind: output, shape index: {}]  }
   0x1   :  { %v16_v0 = vld [vmem:[%s114_s1] sm:$0xff]  ;;  %68 = vset.pattern.permute.xlu0 %v79_v1 }
   0x2   :  { %v18_v2 = vsub.f32 1.0, %v16_v0 }
   0x3   :  { %8 = vsyncpa [#allocation3], 0  ;;  %v28_v3 = vlaneseq  ;;  %v17_v5 = vld [vmem:[%s115_s2] sm:$0x1]  ;;  %vm36_vm0 = vcmask 64512  }
   0x4   :  { %21 = vperm.xlu0 %68, %v18_v2   ;;  %v26_v6 = vsub.f32 1.0, %v17_v5  ;;  %v15_v9 = vld [vmem:[%s113_s0] sm:$0xff]  ;;  %s80_s0 = smov [#allocation2]  }
   0x5   :  { %v29_v4 = vshrl.u32 %v28_v3, 7 }
   0x7   :  { %v30_v7 = vsub.s32 0, %v29_v4 }
   0x9   :  { %v31_v8 = vrot.slane %v26_v6, %v30_v7 }
   0xb   :  { %v33_v10 = vadd.f32 %v31_v8, %v15_v9 }
   0xd   :  { %v34_v13 = vmax.f32 %v33_v10, 0.0 }
  0x7f   :  { %v22_v11 = vpop.permute.xlu0 %21 }
  0x80   :  { %v24_v12 = vadd.f32 %v22_v11, %v15_v9 }
  0x82   :  { %v25_v14 = vmax.f32 %v24_v12, 0.0 }
  0x84   :  { %v35_v15 = vadd.f32 %v34_v13, %v25_v14 }
  0x86   :  { %v37_v16 = vsel %vm36_vm0, %v35_v15, 0.0 }
  0x87   :  { %38 = vadd.xlane.f32.xlu0 %v37_v16 }
 0x110   :  { %v39_v17 = vpop.xlane.xlu0 %38 }
 0x111   :  { %v40_v18 = vrot.slane %v39_v17, 4 }
 0x113   :  { %v41_v19 = vadd.f32 %v40_v18, %v39_v17 }
 0x115   :  { %v42_v20 = vrot.slane %v41_v19, 2 }
 0x117   :  { %v43_v21 = vadd.f32 %v42_v20, %v41_v19 }
 0x119   :  { %v44_v22 = vrot.slane %v43_v21, 1 }
 0x11b   :  { %v45_v23 = vadd.f32 %v44_v22, %v43_v21 }
 0x11d   :  { %64 = vpush %v45_v23 }
 0x14e   :  { %s65_s1 = spop %64 }
 0x14f   :  { %s63_s2 = sadd.f32 -16.0, %s65_s1 }
 0x151   :  { %49 = sst [smem:[#allocation2]] %s63_s2 }
 0x152   :  { %57 = dma.smem_to_hbm %s80_s0, 16, %s116_s3, [#allocation3]  }
 0x153   :  { %77 = dma.done.wait [#allocation3], 16  }
 0x154   :  { %78 = vsyncadd [#allocation3], 4294967280 }
 0x155   :  { %61 = sfence }
 0x156   :  { %62 = vsyncpa [#allocation3], 1 }

</bundles_post_ra>
